<compile_context>
chip_gen: v7x
topology: tpu7x:2x2x1
jax: 0.10.0
libtpu: 0.0.40
codegen_flags: <defaults>
</compile_context>

<pallas_src>
import functools

import jax
import jax.numpy as jnp
from jax.experimental import pallas as pl
from jax.experimental.pallas import tpu as pltpu

LANE = 128       # lane width: feature / reduction dims padded to multiples of this
ROW_TILE = 32    # dst-row tile granule (int8 adj native sublane tiling is (32,128))


def _cdiv(a, b):
    return (a + b - 1) // b


def _round_up(x, m):
    return _cdiv(x, m) * m


def _pad2d(x, rows, cols):
    r, c = x.shape
    return jnp.pad(x, ((0, rows - r), (0, cols - c)))


# ---------------------------------------------------------------------------
# Planning + one-time data preparation (amortized; NOT part of the hot step).
# ---------------------------------------------------------------------------

def plan_sage_conv(n_dst, n_src_rows, f_in, f_out, *, min_dst_rows=0,
                   tm_max=1024, tk_max=2048):
    """Pick adaptive tile sizes / padded dims for one SAGEConv layer.

    tm/tk are derived from the actual problem size (not fixed caps), so padded
    adjacency overshoots by at most ~one sublane/lane group instead of up to 2x.
    min_dst_rows lets the caller request extra dst-row padding so this layer's
    output can feed the next layer's reduction grid without a repack.
    """
    f_pad = _round_up(f_in, LANE)
    o_pad = _round_up(f_out, LANE)

    # dst-row tiling (parallel grid axis). Keep >=2 row tiles when the problem
    # allows it so megacore / v7x's two TensorCores both get work.
    n_row_tiles = _cdiv(n_dst, tm_max)
    if n_row_tiles == 1 and n_dst > ROW_TILE:
        n_row_tiles = 2
    tm = _round_up(_cdiv(n_dst, n_row_tiles), ROW_TILE)
    m_pad = _round_up(max(n_dst, min_dst_rows), tm)

    # src / reduction tiling. Keep k_pad >= m_pad so the x_dst prefix-of-x_src
    # view is always in bounds.
    k_rows = max(n_src_rows, m_pad)
    n_k_tiles = _cdiv(k_rows, tk_max)
    tk = _round_up(_cdiv(k_rows, n_k_tiles), LANE)
    k_pad = _round_up(k_rows, tk)

    return dict(tm=tm, tk=tk, m_pad=m_pad, k_pad=k_pad, f_pad=f_pad, o_pad=o_pad)


def prepare_block(adj, deg, plan, adj_dtype=jnp.int8):
    """One-time pad+cast of a sampled block's adjacency / degrees.

    int8 is exact for 0/1 adjacencies and halves the dominant HBM stream vs bf16.
    If adj carries real-valued edge weights, pass adj_dtype=jnp.bfloat16 instead.
    """
    adj_p = _pad2d(adj, plan["m_pad"], plan["k_pad"]).astype(adj_dtype)
    deg_p = jnp.pad(deg.astype(jnp.float32),
                    (0, plan["m_pad"] - deg.shape[0])).reshape(-1, 1)
    return adj_p, deg_p


def prepare_features(x, plan):
    """One-time pad+cast of input node features to (k_pad, f_pad) bf16."""
    return _pad2d(x.astype(jnp.bfloat16), plan["k_pad"], plan["f_pad"])


def prepare_weights(w_neigh, w_self, bias, plan):
    """One-time pad+cast of a layer's weights (kept as two separate operands)."""
    wn = _pad2d(w_neigh.astype(jnp.bfloat16), plan["f_pad"], plan["o_pad"])
    ws = _pad2d(w_self.astype(jnp.bfloat16), plan["f_pad"], plan["o_pad"])
    b = jnp.pad(bias.astype(jnp.float32),
                (0, plan["o_pad"] - bias.shape[0])).reshape(1, -1)
    return wn, ws, b


# ---------------------------------------------------------------------------
# Kernel
# ---------------------------------------------------------------------------

def _sage_conv_kernel(adj_ref, xsrc_ref, xdst_ref, deg_ref, wn_ref, ws_ref, b_ref,
                      o_ref, acc_ref, self_ref, *, apply_relu):
    k = pl.program_id(1)

    @pl.when(k == 0)
    def _init():
        acc_ref[...] = jnp.zeros_like(acc_ref)
        # Self projection + bias once per row tile, during pipeline fill
        # (off the last-k critical path; replaces the old concat+single-dot).
        self_ref[...] = jnp.dot(xdst_ref[...], ws_ref[...],
                                preferred_element_type=jnp.float32) + b_ref[...]

    # Streaming neighbor sum: int8 adjacency tile upcast to bf16 on the VPU right
    # before the MXU dot (cast cost hidden under DMA), f32 accumulation.
    adj_bf16 = adj_ref[...].astype(jnp.bfloat16)
    acc_ref[...] += jnp.dot(adj_bf16, xsrc_ref[...],
                            preferred_element_type=jnp.float32)

    @pl.when(k == pl.num_programs(1) - 1)
    def _finalize():
        # 'mean' aggregation: 1/deg (exact reciprocal -- runs once per row tile,
        # so exactness is free), isolated dst -> deg clamped to 1 -> zero row.
        inv_deg = pl.reciprocal(jnp.maximum(deg_ref[...], 1.0))
        agg = (acc_ref[...] * inv_deg).astype(jnp.bfloat16)
        out = self_ref[...] + jnp.dot(agg, wn_ref[...],
                                      preferred_element_type=jnp.float32)
        if apply_relu:
            out = jnp.maximum(out, 0.0)
        o_ref[...] = out.astype(o_ref.dtype)


def sage_conv(adj_p, deg_p, x_src_p, wn_p, ws_p, b_p, plan, *,
              apply_relu=False, out_dtype=jnp.float32):
    """One SAGEConv('mean') layer as a tiled, pipelined Pallas kernel.

    All operands are pre-padded/cast by prepare_* (once, outside the hot step).
      adj_p   : [m_pad, k_pad]  int8 (or bf16) adjacency, zero-padded
      deg_p   : [m_pad, 1]      f32 in-degrees
      x_src_p : [>=k_pad, f_pad] bf16 source features (dst nodes are the row prefix)

    Returns [m_pad, o_pad] in out_dtype. Columns beyond the real f_out are exactly
    zero. NOTE: dst rows beyond the real n_dst are NOT zero (they hold
    x_dst@W_self + bias garbage); they are safe only because downstream consumers
    (the next layer's zero adjacency columns / the final row slice) ignore them.
    """
    tm, tk = plan["tm"], plan["tk"]
    m_pad, k_pad = plan["m_pad"], plan["k_pad"]
    f_pad, o_pad = plan["f_pad"], plan["o_pad"]
    assert adj_p.shape == (m_pad, k_pad)
    assert x_src_p.shape[0] >= k_pad and x_src_p.shape[1] == f_pad

    grid = (m_pad // tm, k_pad // tk)
    kern = functools.partial(_sage_conv_kernel, apply_relu=apply_relu)

    return pl.pallas_call(
        kern,
        out_shape=jax.ShapeDtypeStruct((m_pad, o_pad), out_dtype),
        grid_spec=pltpu.PrefetchScalarGridSpec(
            num_scalar_prefetch=0,
            grid=grid,
            in_specs=[
                pl.BlockSpec((tm, tk), lambda i, k: (i, k)),          # adj tile (streams, int8)
                pl.BlockSpec((tk, f_pad), lambda i, k: (k, 0)),       # x_src tile (streams, bf16)
                pl.BlockSpec((tm, f_pad), lambda i, k: (i, 0)),       # x_dst prefix view (resident)
                pl.BlockSpec((tm, 1), lambda i, k: (i, 0)),           # in-degrees
                pl.BlockSpec((f_pad, o_pad), lambda i, k: (0, 0)),    # W_neigh (resident)
                pl.BlockSpec((f_pad, o_pad), lambda i, k: (0, 0)),    # W_self (resident)
                pl.BlockSpec((1, o_pad), lambda i, k: (0, 0)),        # bias (resident)
            ],
            out_specs=pl.BlockSpec((tm, o_pad), lambda i, k: (i, 0)),
            scratch_shapes=[
                pltpu.VMEM((tm, f_pad), jnp.float32),   # neighbor-sum accumulator
                pltpu.VMEM((tm, o_pad), jnp.float32),   # self term + bias
            ],
        ),
        compiler_params=pltpu.CompilerParams(
            dimension_semantics=("parallel", "arbitrary"),
            vmem_limit_bytes=48 * 1024 * 1024,
        ),
    )(adj_p, x_src_p, x_src_p, deg_p, wn_p, ws_p, b_p)


# ---------------------------------------------------------------------------
# Two-layer forward (mirrors StochasticGraphSAGE.forward(blocks, in_feat))
# ---------------------------------------------------------------------------

def prepare_graphsage(params, blocks, in_feat, *, tm_max=1024, tk_max=2048):
    """One-time preparation: tile plans + padded/cast operands for both layers."""
    (adj0, deg0), (adj1, deg1) = blocks
    n_dst0 = adj0.shape[0]
    n_dst1 = adj1.shape[0]
    n_src_rows, f_in = in_feat.shape
    h0 = params["w_neigh1"].shape[1]
    h1 = params["w_neigh2"].shape[1]

    # Plan layer 2 first: its reduction padding (k_pad) dictates how many dst rows
    # layer 1 must emit so h feeds layer 2 with zero repacking (no inter-layer pad).
    plan2 = plan_sage_conv(n_dst1, n_dst0, h0, h1, tm_max=tm_max, tk_max=tk_max)
    plan1 = plan_sage_conv(n_dst0, n_src_rows, f_in, h0,
                           min_dst_rows=plan2["k_pad"], tm_max=tm_max, tk_max=tk_max)

    adj0_p, deg0_p = prepare_block(adj0, deg0, plan1)
    adj1_p, deg1_p = prepare_block(adj1, deg1, plan2)
    return dict(
        plan1=plan1, plan2=plan2, n_dst_out=n_dst1, f_out=h1,
        adj0=adj0_p, deg0=deg0_p, x0=prepare_features(in_feat, plan1),
        adj1=adj1_p, deg1=deg1_p,
        w1=prepare_weights(params["w_neigh1"], params["w_self1"], params["b1"], plan1),
        w2=prepare_weights(params["w_neigh2"], params["w_self2"], params["b2"], plan2),
    )


def stochastic_graphsage_forward(prep):
    """conv1 -> ReLU -> conv2, matching the PyTorch module's forward semantics."""
    wn1, ws1, b1 = prep["w1"]
    wn2, ws2, b2 = prep["w2"]
    # conv1 + F.relu fused; output kept bf16, 128-lane padded and row-padded to
    # exactly layer 2's k_pad, so layer 2 consumes it with zero repacking.
    h = sage_conv(prep["adj0"], prep["deg0"], prep["x0"], wn1, ws1, b1, prep["plan1"],
                  apply_relu=True, out_dtype=jnp.bfloat16)
    # TODO(synk): full two-layer fusion deprioritized — the bf16 lane-padded h
    # round-trip is small vs the adj1 stream for typical fanouts.
    out = sage_conv(prep["adj1"], prep["deg1"], h, wn2, ws2, b2, prep["plan2"],
                    apply_relu=False, out_dtype=jnp.float32)
    return out[:prep["n_dst_out"], :prep["f_out"]]


def _reference_forward(params, blocks, in_feat):
    # pure-JAX f32 reference for correctness
    (adj0, deg0), (adj1, deg1) = blocks
    mm = functools.partial(jnp.matmul, precision=jax.lax.Precision.HIGHEST)
    a0 = adj0 / jnp.maximum(deg0, 1.0)[:, None]
    a1 = adj1 / jnp.maximum(deg1, 1.0)[:, None]
    h_dst = in_feat[: adj0.shape[0]]
    h = mm(mm(a0, in_feat), params["w_neigh1"]) + mm(h_dst, params["w_self1"]) + params["b1"]
    h = jnp.maximum(h, 0.0)
    h_dst = h[: adj1.shape[0]]
    return mm(mm(a1, h), params["w_neigh2"]) + mm(h_dst, params["w_self2"]) + params["b2"]


if __name__ == "__main__":
    key = jax.random.PRNGKey(0)
    in_feats = 16
    h_feats = (32, 16)
    n_src, n_dst0, n_dst1 = 32, 16, 8      # block0: n_src -> n_dst0, block1: n_dst0 -> n_dst1
    keys = jax.random.split(key, 7)

    in_feat = jax.random.normal(keys[0], (n_src, in_feats), jnp.float32)

    # synthetic blocks: random bipartite 0/1 edges + per-dst in-degree ('mean' aggregator)
    adj0 = (jax.random.uniform(keys[1], (n_dst0, n_src)) < 0.3).astype(jnp.float32)
    adj1 = (jax.random.uniform(keys[2], (n_dst1, n_dst0)) < 0.3).astype(jnp.float32)
    deg0 = adj0.sum(-1)
    deg1 = adj1.sum(-1)

    def xavier(k, fan_in, fan_out):
        bound = (6.0 / (fan_in + fan_out)) ** 0.5
        return jax.random.uniform(k, (fan_in, fan_out), jnp.float32, -bound, bound)

    params = dict(
        w_neigh1=xavier(keys[3], in_feats, h_feats[0]),
        w_self1=xavier(keys[4], in_feats, h_feats[0]),
        b1=jnp.zeros((h_feats[0],), jnp.float32),
        w_neigh2=xavier(keys[5], h_feats[0], h_feats[1]),
        w_self2=xavier(keys[6], h_feats[0], h_feats[1]),
        b2=jnp.zeros((h_feats[1],), jnp.float32),
    )

    # Round features/weights to bf16 once so the bf16 kernel and the f32 reference see
    # identical input values (isolates accumulation error only).
    def bf16_round(x):
        return x.astype(jnp.bfloat16).astype(jnp.float32)

    in_feat = bf16_round(in_feat)
    params = {k: (bf16_round(v) if v.ndim == 2 else v) for k, v in params.items()}

    blocks = ((adj0, deg0), (adj1, deg1))

    # One-time preparation (pad + cast + tile planning), then the Pallas forward.
    prep = prepare_graphsage(params, blocks, in_feat)
    out = stochastic_graphsage_forward(prep)
    out = jax.block_until_ready(out)
    assert out.shape == (n_dst1, h_feats[1]), out.shape

    ref = _reference_forward(params, blocks, in_feat)
    assert jnp.allclose(out, ref, atol=5e-2, rtol=5e-2), float(jnp.abs(out - ref).max())

    print("KERNEL_OK")
</pallas_src>

<mosaic_0001>
module attributes {stable_mosaic.version = 11 : i64} {
  func.func @_sage_conv_kernel(%arg0: i32, %arg1: i32, %arg2: memref<32x128xi8, #tpu.memory_space<vmem>>, %arg3: memref<128x128xbf16, #tpu.memory_space<vmem>>, %arg4: memref<32x128xbf16, #tpu.memory_space<vmem>>, %arg5: memref<32x1xf32, #tpu.memory_space<vmem>>, %arg6: memref<128x128xbf16, #tpu.memory_space<vmem>>, %arg7: memref<128x128xbf16, #tpu.memory_space<vmem>>, %arg8: memref<1x128xf32, #tpu.memory_space<vmem>>, %arg9: memref<32x128xbf16, #tpu.memory_space<vmem>>, %arg10: memref<32x128xf32, #tpu.memory_space<vmem>>, %arg11: memref<32x128xf32, #tpu.memory_space<vmem>>) attributes {dimension_semantics = [#tpu.dimension_semantics<parallel>, #tpu.dimension_semantics<arbitrary>], iteration_bounds = array<i64: 4, 1>, scalar_prefetch = 0 : i64, scratch_operands = 2 : i64, tpu.core_type = #tpu.core_type<tc>, window_params = [{transform_indices = @transform_0, window_bounds = array<i64: 32, 128>}, {transform_indices = @transform_1, window_bounds = array<i64: 128, 128>}, {transform_indices = @transform_2, window_bounds = array<i64: 32, 128>}, {transform_indices = @transform_3, window_bounds = array<i64: 32, 1>}, {pipeline_mode = #tpu.pipeline_mode<synchronous>, transform_indices = @transform_4, window_bounds = array<i64: 128, 128>}, {pipeline_mode = #tpu.pipeline_mode<synchronous>, transform_indices = @transform_5, window_bounds = array<i64: 128, 128>}, {pipeline_mode = #tpu.pipeline_mode<synchronous>, transform_indices = @transform_6, window_bounds = array<i64: 1, 128>}, {transform_indices = @transform_7, window_bounds = array<i64: 32, 128>}]} {
    %c0_i32 = arith.constant 0 : i32
    %0 = arith.cmpi eq, %arg1, %c0_i32 : i32
    %1 = arith.extui %0 : i1 to i32
    %c0_i32_0 = arith.constant 0 : i32
    %2 = arith.cmpi ne, %1, %c0_i32_0 : i32
    scf.if %2 {
      %cst_10 = arith.constant 0.000000e+00 : f32
      %13 = vector.broadcast %cst_10 : f32 to vector<32x128xf32>
      %c0_11 = arith.constant 0 : index
      %c0_12 = arith.constant 0 : index
      %14 = vector.load %arg10[%c0_11, %c0_12] : memref<32x128xf32, #tpu.memory_space<vmem>>, vector<32x128xf32>
      tpu.vector_store %arg10[%c0_11, %c0_12], %13 {strides = array<i32>} : memref<32x128xf32, #tpu.memory_space<vmem>>, vector<32x128xf32>,
      %c0_13 = arith.constant 0 : index
      %c0_14 = arith.constant 0 : index
      %15 = vector.load %arg4[%c0_13, %c0_14] : memref<32x128xbf16, #tpu.memory_space<vmem>>, vector<32x128xbf16>
      %c0_15 = arith.constant 0 : index
      %c0_16 = arith.constant 0 : index
      %16 = vector.load %arg7[%c0_15, %c0_16] : memref<128x128xbf16, #tpu.memory_space<vmem>>, vector<128x128xbf16>
      %cst_17 = arith.constant dense<0.000000e+00> : vector<32x128xf32>
      %17 = tpu.matmul %15, %16, %cst_17 {dimension_numbers = #tpu.dot_dimension_numbers<[1], [0], [0], [1], [0, 0, 1, 1], [], []>} : vector<32x128xbf16>, vector<128x128xbf16>, vector<32x128xf32> -> vector<32x128xf32>
      %c0_18 = arith.constant 0 : index
      %c0_19 = arith.constant 0 : index
      %18 = vector.load %arg8[%c0_18, %c0_19] : memref<1x128xf32, #tpu.memory_space<vmem>>, vector<1x128xf32>
      %19 = vector.broadcast %18 : vector<1x128xf32> to vector<32x128xf32>
      %20 = arith.addf %17, %19 : vector<32x128xf32>
      %c0_20 = arith.constant 0 : index
      %c0_21 = arith.constant 0 : index
      %21 = vector.load %arg11[%c0_20, %c0_21] : memref<32x128xf32, #tpu.memory_space<vmem>>, vector<32x128xf32>
      tpu.vector_store %arg11[%c0_20, %c0_21], %20 {strides = array<i32>} : memref<32x128xf32, #tpu.memory_space<vmem>>, vector<32x128xf32>,
    } else {
    }
    %c0 = arith.constant 0 : index
    %c0_1 = arith.constant 0 : index
    %3 = vector.load %arg2[%c0, %c0_1] : memref<32x128xi8, #tpu.memory_space<vmem>>, vector<32x128xi8>
    %4 = arith.sitofp %3 : vector<32x128xi8> to vector<32x128xbf16>
    %c0_2 = arith.constant 0 : index
    %c0_3 = arith.constant 0 : index
    %5 = vector.load %arg10[%c0_2, %c0_3] : memref<32x128xf32, #tpu.memory_space<vmem>>, vector<32x128xf32>
    %c0_4 = arith.constant 0 : index
    %c0_5 = arith.constant 0 : index
    %6 = vector.load %arg3[%c0_4, %c0_5] : memref<128x128xbf16, #tpu.memory_space<vmem>>, vector<128x128xbf16>
    %cst = arith.constant dense<0.000000e+00> : vector<32x128xf32>
    %7 = tpu.matmul %4, %6, %cst {dimension_numbers = #tpu.dot_dimension_numbers<[1], [0], [0], [1], [0, 0, 1, 1], [], []>} : vector<32x128xbf16>, vector<128x128xbf16>, vector<32x128xf32> -> vector<32x128xf32>
    %8 = arith.addf %5, %7 : vector<32x128xf32>
    %c0_6 = arith.constant 0 : index
    %c0_7 = arith.constant 0 : index
    %9 = vector.load %arg10[%c0_6, %c0_7] : memref<32x128xf32, #tpu.memory_space<vmem>>, vector<32x128xf32>
    tpu.vector_store %arg10[%c0_6, %c0_7], %8 {strides = array<i32>} : memref<32x128xf32, #tpu.memory_space<vmem>>, vector<32x128xf32>,
    %c0_i32_8 = arith.constant 0 : i32
    %10 = arith.cmpi eq, %arg1, %c0_i32_8 : i32
    %11 = arith.extui %10 : i1 to i32
    %c0_i32_9 = arith.constant 0 : i32
    %12 = arith.cmpi ne, %11, %c0_i32_9 : i32
    scf.if %12 {
      %c0_10 = arith.constant 0 : index
      %c0_11 = arith.constant 0 : index
      %13 = vector.load %arg5[%c0_10, %c0_11] : memref<32x1xf32, #tpu.memory_space<vmem>>, vector<32x1xf32>
      %cst_12 = arith.constant 1.000000e+00 : f32
      %14 = vector.broadcast %cst_12 : f32 to vector<32x1xf32>
      %15 = arith.maximumf %13, %14 : vector<32x1xf32>
      %16 = tpu.reciprocal %15 : vector<32x1xf32> -> vector<32x1xf32>
      %c0_13 = arith.constant 0 : index
      %c0_14 = arith.constant 0 : index
      %17 = vector.load %arg10[%c0_13, %c0_14] : memref<32x128xf32, #tpu.memory_space<vmem>>, vector<32x128xf32>
      %18 = vector.broadcast %16 : vector<32x1xf32> to vector<32x128xf32>
      %19 = arith.mulf %17, %18 : vector<32x128xf32>
      %20 = arith.truncf %19 : vector<32x128xf32> to vector<32x128xbf16>
      %c0_15 = arith.constant 0 : index
      %c0_16 = arith.constant 0 : index
      %21 = vector.load %arg11[%c0_15, %c0_16] : memref<32x128xf32, #tpu.memory_space<vmem>>, vector<32x128xf32>
      %c0_17 = arith.constant 0 : index
      %c0_18 = arith.constant 0 : index
      %22 = vector.load %arg6[%c0_17, %c0_18] : memref<128x128xbf16, #tpu.memory_space<vmem>>, vector<128x128xbf16>
      %cst_19 = arith.constant dense<0.000000e+00> : vector<32x128xf32>
      %23 = tpu.matmul %20, %22, %cst_19 {dimension_numbers = #tpu.dot_dimension_numbers<[1], [0], [0], [1], [0, 0, 1, 1], [], []>} : vector<32x128xbf16>, vector<128x128xbf16>, vector<32x128xf32> -> vector<32x128xf32>
      %24 = arith.addf %21, %23 : vector<32x128xf32>
      %cst_20 = arith.constant 0.000000e+00 : f32
      %25 = vector.broadcast %cst_20 : f32 to vector<32x128xf32>
      %26 = arith.maximumf %24, %25 : vector<32x128xf32>
      %27 = arith.truncf %26 : vector<32x128xf32> to vector<32x128xbf16>
      %c0_21 = arith.constant 0 : index
      %c0_22 = arith.constant 0 : index
      %28 = vector.load %arg9[%c0_21, %c0_22] : memref<32x128xbf16, #tpu.memory_space<vmem>>, vector<32x128xbf16>
      tpu.vector_store %arg9[%c0_21, %c0_22], %27 {strides = array<i32>} : memref<32x128xbf16, #tpu.memory_space<vmem>>, vector<32x128xbf16>,
    } else {
    }
    return
  }
  func.func @transform_0(%arg0: i32, %arg1: i32) -> (i32, i32) {
    %c0_i32 = arith.constant 0 : i32
    return %arg0, %arg1 : i32, i32
  }
  func.func @transform_1(%arg0: i32, %arg1: i32) -> (i32, i32) {
    %c0_i32 = arith.constant 0 : i32
    %c0_i32_0 = arith.constant 0 : i32
    return %arg1, %c0_i32 : i32, i32
  }
  func.func @transform_2(%arg0: i32, %arg1: i32) -> (i32, i32) {
    %c0_i32 = arith.constant 0 : i32
    %c0_i32_0 = arith.constant 0 : i32
    return %arg0, %c0_i32 : i32, i32
  }
  func.func @transform_3(%arg0: i32, %arg1: i32) -> (i32, i32) {
    %c0_i32 = arith.constant 0 : i32
    %c0_i32_0 = arith.constant 0 : i32
    return %arg0, %c0_i32 : i32, i32
  }
  func.func @transform_4(%arg0: i32, %arg1: i32) -> (i32, i32) {
    %c0_i32 = arith.constant 0 : i32
    %c0_i32_0 = arith.constant 0 : i32
    %c0_i32_1 = arith.constant 0 : i32
    return %c0_i32, %c0_i32_0 : i32, i32
  }
  func.func @transform_5(%arg0: i32, %arg1: i32) -> (i32, i32) {
    %c0_i32 = arith.constant 0 : i32
    %c0_i32_0 = arith.constant 0 : i32
    %c0_i32_1 = arith.constant 0 : i32
    return %c0_i32, %c0_i32_0 : i32, i32
  }
  func.func @transform_6(%arg0: i32, %arg1: i32) -> (i32, i32) {
    %c0_i32 = arith.constant 0 : i32
    %c0_i32_0 = arith.constant 0 : i32
    %c0_i32_1 = arith.constant 0 : i32
    return %c0_i32, %c0_i32_0 : i32, i32
  }
  func.func @transform_7(%arg0: i32, %arg1: i32) -> (i32, i32) {
    %c0_i32 = arith.constant 0 : i32
    %c0_i32_0 = arith.constant 0 : i32
    return %arg0, %c0_i32 : i32, i32
  }
}

</mosaic_0001>

<bundles_post_ra>
// kernel: tpu_custom_call.1
= control target key start
LH: loop header
LB: loop body
LE: loop exit
PB: predicated region body
PF: predicated region fallthrough
CT: control target
= control target key end

     0   :  { %12 = vsyncpa [#allocation5], 0  ;;  %s1827_s0 = inlined_call_operand.hbm [shape: s8[128,128], index: 0, kind: input, shape index: {}]   ;;  %s1828_s1 = inlined_call_operand.vmem [shape: bf16[128,128], index: 1, kind: input, shape index: {}]   ;;  %s1829_s2 = inlined_call_operand.vmem [shape: bf16[128,128], index: 2, kind: input, shape index: {}]   ;;  %s1830_s3 = inlined_call_operand.vmem [shape: f32[128,1], index: 3, kind: input, shape index: {}]   ;;  %s1831_s4 = inlined_call_operand.hbm [shape: bf16[128,128], index: 4, kind: input, shape index: {}]   ;;  %s1832_s5 = inlined_call_operand.hbm [shape: bf16[128,128], index: 5, kind: input, shape index: {}]   ;;  %s1833_s6 = inlined_call_operand.vmem [shape: f32[1,128], index: 6, kind: input, shape index: {}]   ;;  %s1834_s7 = inlined_call_operand.hbm [shape: bf16[128,128], index: 7, kind: output, shape index: {}]  }
   0x1   :  { %14 = vsyncpa [#allocation5 + $0x1], 0 }
   0x2   :  { %15 = vsyncpa [#allocation8], 0 }
   0x3   :  { %16 = vsyncpa [#allocation6], 0 }
   0x4   :  { %18 = vsyncpa [#allocation6 + $0x1], 0  ;;  %s1541_s24 = smov 0   ;;  %s1543_s25 = smov 0  }
   0x5   :  { %s1545_s26 = smov 0   ;;  %s1547_s27 = smov 0  }
   0x6   :  { %s1549_s28 = smov 0   ;;  %s1551_s29 = smov 0  }
   0x7 LB: > { %1841 = sst [smem:[#allocation14_spill]] %s1470_s24  ;;  %s1026_s30 = sadd.s32 4294967295, %s1490_s29   ;;  %s1490_s29 = sphi %s1551_s29, %s24_s29   ;;  %s1486_s28 = sphi %s1549_s28, %s1862_s28   ;;  %s1482_s27 = sphi %s1547_s27, %s1861_s27   ;;  %s1478_s26 = sphi %s1545_s26, %s1860_s26   ;;  %s1474_s25 = sphi %s1543_s25, %s1859_s25   ;;  %s1470_s24 = sphi %s1541_s24, %s1858_s24  }
   0x8   : > { %s1027_s8 = sadd.s32 4294967294, %s1490_s29   ;;  %p58_p0 = scmp.ne.s32.totalorder %s1474_s25, %s1470_s24 }
   0x9   : > { %p1575_p1 = scmp.eq.s32.totalorder %s1026_s30, 0  ;;  %p1579_p2 = scmp.eq.s32.totalorder %s1026_s30, 3 }
   0xa   : > { %p229_p3 = scmp.eq.s32.totalorder %s1027_s8, 3  ;;  %p1028_p5 = scmp.ge.s32.totalorder %s1490_s29, 1 }
   0xb   : > { %s1842_s9 = scalar_select %p1575_p1, 1, 0 }
   0xc   : > { %s1843_s10 = scalar_select %p1579_p2, 1, 0 }
   0xd   : > { %p1585_p4 = por %p1575_p1, %p58_p0  ;;  %p1590_p6 = por %p229_p3, %p58_p0 }
   0xe   : > { %p236_p7 = scmp.lt.s32.totalorder %s1490_s29, 5  ;;  %s1492_s14 = smov [#allocation7]  }
   0xf   : > { %s1844_s11 = scalar_select %p1585_p4, 1, 0 }
  0x10   : > { %s1845_s12 = scalar_select %p1590_p6, 1, 0 }
  0x11   : > { %p1595_p8 = pnand %p1028_p5, %p236_p7  ;;  %s257_s15 = sshll.u32 %s1492_s14, 4  ;;  %s258_s15 = int_to_ptr.vmem [resolvable:$true] %s257_s15 }
  0x12   : > { %1846 = sst [smem:[#allocation15_spill]] %s1845_s12  ;;  %s1493_s17 = smov [#allocation9]  }
  0x13   : > { %s1847_s13 = scalar_select %p1595_p8, 1, 0 }
  0x14   : > { %p1206_p9 = pneg %p1595_p8  ;;  %s270_s18 = sshll.u32 %s1493_s17, 4  ;;  %s1607_s18 = int_to_ptr.vmem [resolvable:$true] %s270_s18 }
  0x15   : > { %s1318_s21 = scalar_lea.hbm %s1831_s4, 1024 }
  0x16   : > { %p1603_p10 = pnand %p1206_p9, %p1575_p1  ;;  %p1319_p11 = scmp.ne.s32.totalorder %s1831_s4, %s1318_s21 }
  0x17   : > { %p1325_p3 = scmp.lt.u32.totalorder %s1318_s21, %s1831_s4 }
  0x18   : > { %p1320_p12 = pneg %p1603_p10 }
  0x1a   : > { %p1321_p13 = pnand %p1320_p12, %p1319_p11 }
  0x1c   : > { %p1322_p0 = pneg %p1321_p13 }
  0x1e   : > { %p1327_p5 = pnand %p1325_p3, %p1322_p0 }
  0x20   : > { %1330 = shalt.err (!%p1327_p5)
}
  0x21   : > { %s1331_s14 = scalar_lea.vmem %s258_s15, 1024  ;;  %p1339_p1 = scmp.lt.s32.totalorder %s258_s15, %s258_s15 }
  0x22   : > { %p1332_p7 = scmp.ne.s32.totalorder %s258_s15, %s1331_s14  ;;  %p1340_p4 = scmp.lt.s32.totalorder %s1331_s14, %s1331_s14 }
  0x24   : > { %p1334_p9 = pnand %p1332_p7, %p1320_p12  ;;  %p1341_p8 = por %p1340_p4, %p1339_p1 }
  0x26   : > { %p1335_p6 = pneg %p1334_p9 }
  0x28   : > { %p1342_p2 = pnand %p1341_p8, %p1335_p6 }
  0x2a   : > { %1345 = shalt.err (!%p1342_p2)
}
  0x2b   : > { %s1494_s17 = smov 64   ;;  %s1495_s19 = smov 4  }
  0x2c   : > { %1209 = dma.hbm_to_vmem [thread:$0]  (!%p1603_p10), %s1831_s4, 1024, %s258_s15, [#allocation8], %s1494_s17, %s1494_s17, %s1495_s19  }
  0x2d   : > { %s1346_s30 = scalar_lea.hbm %s1832_s5, 1024 }
  0x2e   : > { %p1347_p11 = scmp.ne.s32.totalorder %s1832_s5, %s1346_s30  ;;  %p1353_p4 = scmp.lt.u32.totalorder %s1346_s30, %s1832_s5 }
  0x30   : > { %p1349_p1 = pnand %p1347_p11, %p1320_p12 }
  0x32   : > { %p1350_p2 = pneg %p1349_p1 }
  0x34   : > { %p1355_p6 = pnand %p1353_p4, %p1350_p2 }
  0x36   : > { %1358 = shalt.err (!%p1355_p6)
}
  0x37   : > { %s1359_s15 = scalar_lea.vmem %s1607_s18, 1024  ;;  %p1367_p3 = scmp.lt.s32.totalorder %s1607_s18, %s1607_s18 }
  0x38   : > { %p1360_p8 = scmp.ne.s32.totalorder %s1607_s18, %s1359_s15  ;;  %p1368_p5 = scmp.lt.s32.totalorder %s1359_s15, %s1359_s15 }
  0x3a   : > { %p1362_p13 = pnand %p1360_p8, %p1320_p12  ;;  %p1369_p7 = por %p1368_p5, %p1367_p3 }
  0x3c   : > { %p1363_p0 = pneg %p1362_p13 }
  0x3e   : > { %p1370_p9 = pnand %p1369_p7, %p1363_p0 }
  0x40   : > { %1373 = shalt.err (!%p1370_p9)
}
  0x41   : > { %1212 = dma.hbm_to_vmem [thread:$0]  (!%p1603_p10), %s1832_s5, 1024, %s1607_s18, [#allocation8], %s1494_s17, %s1494_s17, %s1495_s19  }
  0x42   : > { %s36_s20 = sadd.s32 1, %s1486_s28  ;;  %s45_s21 = sadd.s32 1, %s1478_s26 }
  0x43   : > { %p38_p12 = scmp.ge.s32.totalorder %s36_s20, 4  ;;  %p52_p11 = scmp.ne.s32.totalorder %s1478_s26, %s1474_s25 }
  0x44   : > { %p53_p1 = scmp.eq.s32.totalorder %s1490_s29, 0  ;;  %p1223_p2 = scmp.lt.s32.totalorder %s1490_s29, 4 }
  0x45   : > { %s1864_s20 = smov (%p38_p12, %s36_s20), 0  ;;  %p1849_p6 = scmp.ne.s32.totalorder %s1843_s10, 0 }
  0x46   : > { %p54_p4 = por %p53_p1, %p52_p11  ;;  %s40_s22 = ssub.s32 %s1486_s28, %s1864_s20 }
  0x47   : > { %p1666_p8 = por %p1849_p6, %p52_p11  ;;  %s287_s23 = sand.u32 1, %s1478_s26  }
  0x48   : > { %p43_p13 = scmp.eq.s32.totalorder %s40_s22, 0  ;;  %s1033_s18 = sshll.u32 %s287_s23, 3 }
  0x49   : > { %s1034_s17 = sshll.u32 %s1486_s28, 7  ;;  %s291_s10 = scalar_lea.vmem [#allocation4], %s1033_s18 }
  0x4a   : > { %s1675_s19 = scalar_select %p43_p13, %s1478_s26, %s45_s21  }
  0x4b   : > { %s1680_s14 = scalar_lea.hbm %s1827_s0, %s1034_s17  ;;  %s299_s15 = sshll.u32 %s291_s10, 4  ;;  %s1688_s15 = int_to_ptr.vmem [resolvable:$true] %s299_s15 }
  0x4c   : > { %p1684_p10 = pnand %p1223_p2, %p54_p4  ;;  %s288_s12 = scalar_lea.sflag [#allocation5], %s287_s23 }
  0x4d   : > { %s1374_s21 = scalar_lea.hbm %s1680_s14, 128  ;;  %s1379_s17 = scalar_lea.hbm %s1827_s0, 512 }
  0x4e   : > { %p1375_p0 = scmp.ne.s32.totalorder %s1680_s14, %s1374_s21  ;;  %p1376_p3 = pneg %p1684_p10 }
  0x4f   : > { %p1380_p9 = scmp.lt.u32.totalorder %s1680_s14, %s1827_s0  ;;  %p1381_p12 = scmp.lt.u32.totalorder %s1379_s17, %s1374_s21 }
  0x50   : > { %p1377_p5 = pnand %p1376_p3, %p1375_p0  ;;  %p1383_p1 = scmp.lt.u32.totalorder %s1374_s21, %s1680_s14 }
  0x51   : > { %p1382_p11 = por %p1381_p12, %p1380_p9 }
  0x52   : > { %p1378_p7 = pneg %p1377_p5 }
  0x53   : > { %p1384_p2 = por %p1383_p1, %p1382_p11 }
  0x55   : > { %p1385_p4 = pnand %p1384_p2, %p1378_p7 }
  0x57   : > { %1388 = shalt.err (!%p1385_p4)
}
  0x58   : > { %s1389_s23 = scalar_lea.vmem %s1688_s15, 128  ;;  %s1496_s10 = smov [#allocation4]  }
  0x59   : > { %p1390_p6 = scmp.ne.s32.totalorder %s1688_s15, %s1389_s23  ;;  %s1394_s22 = sshll.u32 %s1496_s10, 4  ;;  %s1395_s22 = int_to_ptr.vmem [resolvable:$false] %s1394_s22 }
  0x5a   : > { %s1396_s18 = scalar_lea.vmem %s1395_s22, 256  ;;  %p1397_p5 = scmp.lt.s32.totalorder %s1688_s15, %s1395_s22 }
  0x5b   : > { %p1392_p13 = pnand %p1390_p6, %p1376_p3  ;;  %p1398_p9 = scmp.lt.s32.totalorder %s1396_s18, %s1389_s23 }
  0x5d   : > { %p1393_p0 = pneg %p1392_p13  ;;  %p1399_p12 = por %p1398_p9, %p1397_p5 }
  0x5f   : > { %p1400_p11 = pnand %p1399_p12, %p1393_p0 }
  0x61   : > { %1403 = shalt.err (!%p1400_p11)
}
  0x62   : > { %1216 = dma.hbm_to_vmem [thread:$0]  (!%p1684_p10), %s1680_s14, 128, %s1688_s15, %s288_s12  }
  0x63   : > { %p1852_p7 = scmp.ne.s32.totalorder %s1847_s13, 0 }
  0x64   : > { %s1718_s21 = sand.u32 (!%p1852_p7), 1, %s1474_s25   ;;  %p1853_p3 = scmp.ne.s32.totalorder (!%p1852_p7), %s1844_s11, 0 }
  0x65   : > { %326 = sbr.rel (%p1852_p7) target bundleno = 602 (0x25a), region = 48  ;;  %s1036_s17 = sshll.u32 (!%p1852_p7), %s1718_s21, 3 }
  0x66   : > { %s329_s30 = scalar_lea.sflag (!%p1852_p7), [#allocation5], %s1718_s21  ;;  %s332_s8 = scalar_lea.vmem (!%p1852_p7), [#allocation4], %s1036_s17 }
  0x6c   : > { %1457 = dma.done.wait (%p1853_p3), %s329_s30, 128  }
  0x6d   : > { %1459 = vsyncadd (%p1853_p3), %s329_s30, 4294967168  ;;  %p1854_p1 = scmp.ne.s32.totalorder %s1842_s9, 0 }
  0x6f   : > { %1461 = dma.done.wait (%p1854_p1), [#allocation8], 2048  }
  0x70   : > { %1463 = vsyncadd (%p1854_p1), [#allocation8], 4294965248  ;;  %s1040_s13 = sshll.u32 %s1482_s27, 2  ;;  %v1497_v0 = vmov 0   ;;  %v1284_v1 = vld [vmem:[%s1828_s1] sm:$0xff]   ;;  %v1285_v2 = vld [vmem:[%s1828_s1 + $0x8] sm:$0xff]  }
  0x71   : > { %1282 = vset.pattern.permute.xlu0 %v1497_v0  ;;  %1283 = vset.pattern.permute.xlu1 %v1497_v0  ;;  %p393_p10 = scmp.lt.s32.totalorder %s1040_s13, 15  ;;  %v1286_v3 = vld [vmem:[%s1828_s1 + $0x10] sm:$0xff]   ;;  %v1287_v4 = vld [vmem:[%s1828_s1 + $0x18] sm:$0xff]   ;;  %v554_v5 = vld [vmem:[%s332_s8] sm:$0xff]  ;;  %s1039_s17 = sshll.u32 %s1718_s21, 4 }
  0x72   : > { %1146 = vmatprep.subr.bf16.mxu1 %v1284_v1  ;;  %v555_v8 = vunpack.c.l.s8.bf16 %v554_v5  ;;  %v1292_v14 = vld [vmem:[#allocation9] sm:$0xff]   ;;  %v1293_v15 = vld [vmem:[#allocation9 + $0x8] sm:$0xff]   ;;  %v1288_v16 = vld [vmem:[%s1828_s1 + $0x20] sm:$0xff]   ;;  %v556_v30 = vunpack.c.h.s8.bf16 %v554_v5  ;;  %s385_s15 = scalar_lea.vmem [#allocation10], %s1039_s17  ;;  %s1084_s8 = sshll.u32 %s1482_s27, 8 }
  0x73   : > { %s1866_s13 = smov (!%p393_p10, %s1040_s13), 15  ;;  %1147 = vmatpush3.bf16.msra.mxu1 %v1284_v1  ;;  %1126 = vmatprep.subr.bf16.mxu0 %v1292_v14  ;;  %v1294_v18 = vld [vmem:[#allocation9 + $0x10] sm:$0xff]   ;;  %v1289_v19 = vld [vmem:[%s1828_s1 + $0x28] sm:$0xff]   ;;  %v1290_v22 = vld [vmem:[%s1828_s1 + $0x30] sm:$0xff]   ;;  %s886_s11 = sshll.u32 %s385_s15, 4  ;;  %s1774_s11 = int_to_ptr.vmem [resolvable:$true] %s886_s11 }
  0x74   : > { %s1043_s9 = sshll.u32 %s1866_s13, 3  ;;  %1148 = vmatprep.subr.bf16.mxu1 %v1285_v2  ;;  %s1041_s14 = sshll.u32 %s1866_s13, 2  ;;  %1162 = vmatprep.mubr.bf16.mxu1 %v555_v8  ;;  %v1295_v20 = vld [vmem:[#allocation9 + $0x18] sm:$0xff]   ;;  %v1296_v24 = vld [vmem:[#allocation9 + $0x20] sm:$0xff]   ;;  %v1291_v27 = vld [vmem:[%s1828_s1 + $0x38] sm:$0xff]  }
  0x75   : > { %s402_s18 = scalar_lea.vmem %s1830_s3, %s1043_s9  ;;  %1127 = vmatpush3.bf16.msra.mxu0 %v1292_v14  ;;  %s1756_s13 = scalar_lea.vmem %s1829_s2, %s1041_s14  ;;  %v1297_v28 = vld [vmem:[#allocation9 + $0x28] sm:$0xff]   ;;  %v1298_v31 = vld [vmem:[#allocation9 + $0x30] sm:$0xff]   ;;  %v1299_v32 = vld [vmem:[#allocation9 + $0x38] sm:$0xff]  }
  0x76   : > { %v685_v6 = vld [vmem:[%s402_s18] sm:$0xff]  ;;  %v686_v7 = vld [vmem:[%s402_s18 + $0x8] sm:$0xff]  ;;  %v688_v9 = vld [vmem:[%s402_s18 + $0x18] sm:$0xff]  ;;  %1128 = vmatprep.subr.bf16.mxu0 %v1293_v15  ;;  %s1779_s9 = scalar_lea.hbm %s1834_s7, %s1084_s8  ;;  %s873_s12 = scalar_lea.sflag [#allocation6], %s1718_s21 }
  0x77   : > { %1149 = vmatpush3.bf16.msra.mxu1 %v1285_v2  ;;  %v689_v10 = vmax.f32 %v685_v6, 1.0  ;;  %v690_v11 = vmax.f32 %v686_v7, 1.0  ;;  %v687_v12 = vld [vmem:[%s402_s18 + $0x10] sm:$0xff]  ;;  %v692_v17 = vmax.f32 %v688_v9, 1.0  ;;  %v1300_v21 = vld [vmem:[%s1756_s13] sm:$0xff]   ;;  %v1302_v34 = vld [vmem:[%s1756_s13 + $0x8] sm:$0xff]  }
  0x78   : > { %1150 = vmatprep.subr.bf16.mxu1 %v1286_v3  ;;  %v691_v13 = vmax.f32 %v687_v12, 1.0  ;;  %1142 = vmatprep.mubr.bf16.mxu0 %v1300_v21  ;;  %v1301_v33 = vld [vmem:[#allocation7] sm:$0xff]   ;;  %v1303_v35 = vld [vmem:[#allocation7 + $0x8] sm:$0xff]   ;;  %v1304_v36 = vld [vmem:[#allocation7 + $0x10] sm:$0xff]   ;;  %s1404_s27 = scalar_lea.vmem %s1774_s11, 256  ;;  %s1498_s23 = smov [#allocation10]  }
  0x79   : > { %1310 = vrcp.f32 %v689_v10  ;;  %1129 = vmatpush3.bf16.msra.mxu0 %v1293_v15  ;;  %v1305_v37 = vld [vmem:[#allocation7 + $0x18] sm:$0xff]   ;;  %v1306_v38 = vld [vmem:[#allocation7 + $0x20] sm:$0xff]   ;;  %v1307_v39 = vld [vmem:[#allocation7 + $0x28] sm:$0xff]   ;;  %p1405_p2 = scmp.ne.s32.totalorder %s1774_s11, %s1404_s27  ;;  %s1408_s10 = sshll.u32 %s1498_s23, 4  ;;  %s1409_s10 = int_to_ptr.vmem [resolvable:$false] %s1408_s10 }
  0x7a   : > { %1312 = vrcp.f32 %v690_v11  ;;  %1130 = vmatprep.subr.bf16.mxu0 %v1294_v18  ;;  %v1308_v40 = vld [vmem:[#allocation7 + $0x30] sm:$0xff]   ;;  %v1309_v41 = vld [vmem:[#allocation7 + $0x38] sm:$0xff]   ;;  %s1410_s22 = scalar_lea.vmem %s1409_s10, 512  ;;  %p1411_p13 = scmp.lt.s32.totalorder %s1774_s11, %s1409_s10 }
  0x7b   : > { %1151 = vmatpush3.bf16.msra.mxu1 %v1286_v3  ;;  %1314 = vrcp.f32 %v691_v13  ;;  %v1044_v56 = vld [vmem:[%s1833_s6] ss:$0 sm:$0xff]  ;;  %p1406_p4 = pnand %p1405_p2, %p1666_p8  ;;  %p1412_p0 = scmp.lt.s32.totalorder %s1410_s22, %s1404_s27 }
  0x7c   : > { %1152 = vmatprep.subr.bf16.mxu1 %v1287_v4  ;;  %1316 = vrcp.f32 %v692_v17 }
  0x7d   : > { %1131 = vmatpush3.bf16.msra.mxu0 %v1294_v18  ;;  %p1407_p6 = pneg %p1406_p4  ;;  %p1413_p5 = por %p1412_p0, %p1411_p13 }
  0x7e   : > { %1132 = vmatprep.subr.bf16.mxu0 %v1295_v20 }
  0x7f   : > { %1153 = vmatpush3.bf16.msra.mxu1 %v1287_v4  ;;  %p1414_p9 = pnand %p1413_p5, %p1407_p6 }
  0x80   : > { %1154 = vmatprep.subr.bf16.mxu1 %v1288_v16 }
  0x81   : > { %1133 = vmatpush3.bf16.msra.mxu0 %v1295_v20 }
  0x82   : > { %1134 = vmatprep.subr.bf16.mxu0 %v1296_v24 }
  0x83   : > { %1155 = vmatpush3.bf16.msra.mxu1 %v1288_v16  ;;  %v1311_v23 = vpop.eup %1310 }
  0x84   : > { %1156 = vmatprep.subr.bf16.mxu1 %v1289_v19  ;;  %703 = vperm.xlu0 %1282, %v1311_v23   ;;  %v1313_v25 = vpop.eup %1312 }
  0x85   : > { %v1315_v26 = vpop.eup %1314  ;;  %1135 = vmatpush3.bf16.msra.mxu0 %v1296_v24 }
  0x86   : > { %713 = vperm.xlu1 %1283, %v1315_v26   ;;  %v1317_v29 = vpop.eup %1316  ;;  %1136 = vmatprep.subr.bf16.mxu0 %v1297_v28 }
  0x87   : > { %1157 = vmatpush3.bf16.msra.mxu1 %v1289_v19 }
  0x88   : > { %1158 = vmatprep.subr.bf16.mxu1 %v1290_v22  ;;  %708 = vperm.xlu0 %1282, %v1313_v25  }
  0x89   : > { %1137 = vmatpush3.bf16.msra.mxu0 %v1297_v28 }
  0x8a   : > { %718 = vperm.xlu1 %1283, %v1317_v29   ;;  %1138 = vmatprep.subr.bf16.mxu0 %v1298_v31 }
  0x8b   : > { %1159 = vmatpush3.bf16.msra.mxu1 %v1290_v22 }
  0x8c   : > { %1160 = vmatprep.subr.bf16.mxu1 %v1291_v27 }
  0x8d   : > { %1139 = vmatpush3.bf16.msra.mxu0 %v1298_v31 }
  0x8e   : > { %1140 = vmatprep.subr.bf16.mxu0 %v1299_v32 }
  0x8f   : > { %1161 = vmatpush3.bf16.msra.mxu1 %v1291_v27 }
  0x91   : > { %1141 = vmatpush3.bf16.msra.mxu0 %v1299_v32 }
  0x92   : > { %1163 = vmatmul.mubr.bf16.vlgmr.msra.gmra.mrb[0].mxu1 %v556_v30  ;;  %1166 = vmatprep.subr.bf16.mxu0 %v1301_v33 }
  0x94   : > { %1143 = vmatmul.mubr.bf16.vlgmr.msra.gmra.mrb[0].mxu0 %v1302_v34 }
  0x95   : > { %1167 = vmatpush3.bf16.msra.mxu0 %v1301_v33 }
  0x96   : > { %1168 = vmatprep.subr.bf16.mxu0 %v1303_v35 }
  0x99   : > { %1169 = vmatpush3.bf16.msra.mxu0 %v1303_v35 }
  0x9a   : > { %1170 = vmatprep.subr.bf16.mxu0 %v1304_v36 }
  0x9d   : > { %1171 = vmatpush3.bf16.msra.mxu0 %v1304_v36 }
  0x9e   : > { %1172 = vmatprep.subr.bf16.mxu0 %v1305_v37 }
  0xa1   : > { %1173 = vmatpush3.bf16.msra.mxu0 %v1305_v37 }
  0xa2   : > { %1174 = vmatprep.subr.bf16.mxu0 %v1306_v38 }
  0xa5   : > { %1175 = vmatpush3.bf16.msra.mxu0 %v1306_v38 }
  0xa6   : > { %1176 = vmatprep.subr.bf16.mxu0 %v1307_v39 }
  0xa9   : > { %1177 = vmatpush3.bf16.msra.mxu0 %v1307_v39 }
  0xaa   : > { %1178 = vmatprep.subr.bf16.mxu0 %v1308_v40 }
  0xad   : > { %1179 = vmatpush3.bf16.msra.mxu0 %v1308_v40 }
  0xae   : > { %1180 = vmatprep.subr.bf16.mxu0 %v1309_v41 }
  0xb1   : > { %1181 = vmatpush3.bf16.msra.mxu0 %v1309_v41 }
 0x103   : > { %v704_v43 = vpop.permute.xlu0 %703 }
 0x105   : > { %v714_v42 = vpop.permute.xlu1 %713 }
 0x107   : > { %v709_v48 = vpop.permute.xlu0 %708 }
 0x109   : > { %v719_v46 = vpop.permute.xlu1 %718 }
 0x165   : > { %v1164_v44 = vpop.f32.mrb[0].mxu1 }
 0x166   : > { %v659_v45 = vpop.f32.mrb[1].mxu1  ;;  %v723_v49 = vmul.f32 %v1164_v44, %v714_v42 }
 0x167   : > { %v1165_v47 = vpop.f32.mrb[2].mxu1  ;;  %v721_v52 = vmul.f32 %v704_v43, %v659_v45 }
 0x168   : > { %v724_v50 = vmul.f32 %v1165_v47, %v719_v46  ;;  %v662_v51 = vpop.f32.mrb[3].mxu1 }
 0x169   : > { %v722_v53 = vmul.f32 %v709_v48, %v662_v51 }
 0x16a   : > { %v726_v54 = vpack.c.bf16 %v724_v50, %v723_v49 }
 0x16b   : > { %v725_v55 = vpack.c.bf16 %v722_v53, %v721_v52 }
 0x16d   : > { %1182 = vmatprep.mubr.bf16.mxu0 %v725_v55 }
 0x16e   : > { %1183 = vmatmul.mubr.bf16.vlgmr.msra.gmra.mrb[0].mxu0 %v726_v54 }
 0x241   : > { %v1184_v57 = vpop.f32.mrb[0].mxu0 }
 0x242   : > { %v1186_v58 = vadd.f32 %v1184_v57, %v1044_v56  ;;  %v829_v59 = vpop.f32.mrb[1].mxu0 }
 0x243   : > { %v1187_v60 = vadd.f32 %v1044_v56, %v829_v59  ;;  %v1185_v61 = vpop.f32.mrb[2].mxu0 }
 0x244   : > { %v1188_v62 = vadd.f32 %v1185_v61, %v1044_v56  ;;  %v832_v63 = vpop.f32.mrb[3].mxu0  ;;  %v850_v1 = vmax.f32 %v1186_v58, 0.0 }
 0x245   : > { %v1189_v0 = vadd.f32 %v1044_v56, %v832_v63  ;;  %v848_v3 = vmax.f32 %v1187_v60, 0.0 }
 0x246   : > { %v851_v2 = vmax.f32 %v1188_v62, 0.0 }
 0x247   : > { %v849_v4 = vmax.f32 %v1189_v0, 0.0 }
 0x248   : > { %v1093_v5 = vpack.c.bf16 %v851_v2, %v850_v1 }
 0x249   : > { %v1088_v6 = vpack.c.bf16 %v849_v4, %v848_v3 }
 0x24a   : > { %1095 = vst [vmem:[%s385_s15 + $0x8] sm:$0xff] %v1093_v5  }
 0x24b   : > { %1089 = vst [vmem:[%s385_s15] sm:$0xff] %v1088_v6  }
 0x24c   : > { %1417 = shalt.err (!%p1414_p9)
}
 0x24d   : > { %s1418_s18 = scalar_lea.hbm %s1779_s9, 256  ;;  %s1422_s14 = scalar_lea.hbm %s1834_s7, 1024 }
 0x24e   : > { %p1419_p12 = scmp.ne.s32.totalorder %s1779_s9, %s1418_s18  ;;  %p1423_p3 = scmp.lt.u32.totalorder %s1779_s9, %s1834_s7 }
 0x24f   : > { %p1424_p1 = scmp.lt.u32.totalorder %s1422_s14, %s1418_s18  ;;  %p1426_p2 = scmp.lt.u32.totalorder %s1418_s18, %s1779_s9 }
 0x250   : > { %p1420_p11 = pnand %p1419_p12, %p1666_p8 }
 0x251   : > { %p1425_p10 = por %p1424_p1, %p1423_p3 }
 0x252   : > { %p1421_p7 = pneg %p1420_p11 }
 0x253   : > { %p1427_p4 = por %p1426_p2, %p1425_p10 }
 0x255   : > { %p1428_p6 = pnand %p1427_p4, %p1421_p7 }
 0x257   : > { %1431 = shalt.err (!%p1428_p6)
}
 0x258   : > { %s1499_s24 = smov 64   ;;  %s1500_s13 = smov 4  }
 0x259   : > { %1204 = dma.vmem_to_hbm [thread:$0]  (%p1666_p8), %s1774_s11, 256, %s1779_s9, %s873_s12, %s1499_s24, %s1499_s24, %s1500_s13  }
 0x25a PF: > { %s1855_s27 = sld [smem:[#allocation14_spill]]  ;;  %s1856_s23 = sld [smem:[#allocation15_spill]] }
 0x25b   : > { %p1226_p13 = scmp.ge.s32.totalorder %s1490_s29, 2 }
 0x260   : > { %s901_s10 = sand.u32 1, %s1855_s27   ;;  %p1857_p0 = scmp.ne.s32.totalorder %s1856_s23, 0 }
 0x261   : > { %s902_s22 = scalar_lea.sflag [#allocation6], %s901_s10 }
 0x262   : > { %p1218_p5 = pnand %p1226_p13, %p1857_p0 }
 0x264   : > { %1465 = dma.done.wait (!%p1218_p5), %s902_s22, 256  }
 0x265   : > { %1467 = vsyncadd (!%p1218_p5), %s902_s22, 4294967040  ;;  %s24_s29 = sadd.s32 1, %s1490_s29   ;;  %s1858_s24 = smov %s1474_s25 }
 0x266   : > { %p21_p9 = scmp.ge.s32.totalorder %s24_s29, 6   ;;  %s1859_s25 = smov %s1478_s26 }
 0x267   : > { %s1860_s26 = smov %s1675_s19  ;;  %s1861_s27 = smov %s1486_s28 }
 0x268   : > { %s1862_s28 = smov %s1864_s20  ;;  %23 = sbr.rel (!%p21_p9) target bundleno = 7 (0x7), region = 118 }
 0x26f   :  { %907 = vsyncpa [#allocation5], 1 }
 0x270   :  { %909 = vsyncpa [#allocation5 + $0x1], 1 }
 0x271   :  { %910 = vsyncpa [#allocation8], 1 }
 0x272   :  { %911 = vsyncpa [#allocation6], 1 }
 0x273   :  { %913 = vsyncpa [#allocation6 + $0x1], 1 }

</bundles_post_ra>
